<compile_context>
chip_gen: v7x
topology: tpu7x:2x2x1
jax: 0.10.0
libtpu: 0.0.40
codegen_flags: <defaults>
</compile_context>

<pallas_src>
import functools

import jax
import jax.numpy as jnp
from jax.experimental import pallas as pl
from jax.experimental.pallas import tpu as pltpu


def ntd_kernel(n_h, n_w, cc, w1_resident,
               v_ref, sel_ref, w1_ref, whw_ref, out_ref,
               acc_c, hp_acc, wp_acc):
    """Grid = (batch_block, channel_chunk); channel chunk is the reduction axis."""
    ci = pl.program_id(1)

    @pl.when(ci == 0)
    def _init():
        acc_c[...] = jnp.zeros_like(acc_c)
        hp_acc[...] = jnp.zeros_like(hp_acc)
        wp_acc[...] = jnp.zeros_like(wp_acc)

    v = v_ref[...]                                   # (tb, cc, H*W), native dtype
    tb, cc_blk, hw = v.shape
    v2 = v.reshape(tb * cc_blk, hw)

    # One fused selection matmul on the MXU (f32 accumulation):
    #   cols [0, H)   -> per-h sums (summed over w)   : width-branch pool
    #   cols [H, H+W) -> per-w sums (summed over h)   : height-branch pool
    #   col  H+W      -> full H*W sum per channel     : channel-branch pool
    s = jnp.dot(v2, sel_ref[...], preferred_element_type=jnp.float32)
    s3 = s.reshape(tb, cc_blk, n_h + n_w + 1)

    # Channel branch: matmul partial product over this channel chunk.
    if w1_resident:
        w1_blk = w1_ref[pl.ds(pl.multiple_of(ci * cc, cc), cc), :]
    else:
        w1_blk = w1_ref[...]
    cp = s3[:, :, n_h + n_w]                         # (tb, cc): full HW sum / channel
    acc_c[...] += jnp.dot(cp, w1_blk, preferred_element_type=jnp.float32)

    # Height (per-w) and width (per-h) branch pools accumulated over channels.
    wp_acc[...] += jnp.sum(s3[:, :, :n_h], axis=1)               # (tb, H)
    hp_acc[...] += jnp.sum(s3[:, :, n_h:n_h + n_w], axis=1)      # (tb, W)

    @pl.when(ci == pl.num_programs(1) - 1)
    def _finalize():
        # Fused height+width branch matmul against a block-diagonal weight whose
        # columns are zero-padded so the final store is an unmasked lane-dense vst.
        pooled_hw = jnp.concatenate([hp_acc[...], wp_acc[...]], axis=-1)   # (tb, W+H)
        hw_out = jnp.dot(pooled_hw, whw_ref[...],
                         preferred_element_type=jnp.float32)
        res = jax.nn.sigmoid(jnp.concatenate([acc_c[...], hw_out], axis=-1))
        out_ref[...] = res[:, None, :].astype(out_ref.dtype)


def _round_up(x, m):
    return -(-x // m) * m


def _pick_tiles(B, C, HW, elt_bytes, v_tile_budget):
    """Pick (tb, cc): tb | B, cc | C with cc % 8 == 0 (or cc == C).

    Largest v tile under the budget; grow the channel chunk first, then the
    batch block, keeping B // tb >= 2 (both v7x TensorCores stay busy)."""
    cc_cands = sorted({C, *(d for d in range(C - C % 8, 0, -8) if d and C % d == 0)},
                      reverse=True)
    cc = next((c for c in cc_cands if c * HW * elt_bytes <= v_tile_budget),
              cc_cands[-1])
    tb_cands = [d for d in range(B, 0, -1) if B % d == 0]
    if B >= 2:
        tb_cands = [d for d in tb_cands if B // d >= 2] or [1]
    tb = next((t for t in tb_cands if t * cc * HW * elt_bytes <= v_tile_budget),
              tb_cands[-1])
    return tb, cc


def ntd_forward(v, w1, w2, w3, *, rank, tb=None, c_chunk=None, w1_resident=None,
                v_tile_budget=8 << 20):
    """v: (B, C, H, W); w1: (rank, C, C); w2: (rank, H, H); w3: (rank, W, W).

    Returns (channel_forward, height_forward, width_forward) with shapes
    (B, C, rank), (B, H, rank), (B, W, rank) — same as the PyTorch module."""
    B, C, H, W = v.shape
    assert H == W, "same constraint as the PyTorch code (H must equal W)"
    HW = H * W
    f32 = jnp.float32
    elt = jnp.dtype(v.dtype).itemsize

    auto_tb, auto_cc = _pick_tiles(B, C, HW, elt, v_tile_budget)
    cc = c_chunk if c_chunk is not None else auto_cc
    tb = tb if tb is not None else auto_tb
    assert C % cc == 0 and (cc % 8 == 0 or cc == C), "cc must be mult of 8 or == C"
    assert B % tb == 0, "tb must divide B"
    n_c = C // cc
    if w1_resident is None:
        # Keep the channel weight VMEM-resident only when it (double-buffered)
        # stays comfortably inside the budget (safe on v7x's 64 MiB VMEM).
        w1_resident = n_c > 1 and (2 * C * C * rank * 4) <= (16 << 20)

    # Lane-dense view of v in its native dtype (no host upcast).
    v3 = v.reshape(B, C, HW)

    # Fused 0/1 selection matrix (exact in bf16/f16 too): per-h | per-w | ones.
    hw_idx = jnp.arange(HW, dtype=jnp.int32)
    e_w = (hw_idx[:, None] // W == jnp.arange(H, dtype=jnp.int32)[None, :])
    e_h = (hw_idx[:, None] % W == jnp.arange(W, dtype=jnp.int32)[None, :])
    sel = jnp.concatenate([e_w, e_h, jnp.ones((HW, 1), dtype=jnp.bool_)],
                          axis=1).astype(v.dtype)                   # (HW, H+W+1)

    # Flattened, rank-minor conv weights with the AdaptiveAvgPool(1) divisions
    # folded in, so the kernel output columns are already o*rank + r.
    w1f = jnp.transpose(w1, (2, 1, 0)).reshape(C, C * rank).astype(f32) / (H * W)
    w2f = jnp.transpose(w2, (2, 1, 0)).reshape(H, H * rank).astype(f32) / (C * H)
    w3f = jnp.transpose(w3, (2, 1, 0)).reshape(W, W * rank).astype(f32) / (C * W)

    n_out = (C + H + W) * rank
    n_out_pad = _round_up(n_out, 128)                # lane-dense output width
    hw_cols = n_out_pad - C * rank
    # Block-diagonal fused weight: rows [0,W) -> conv1_2, rows [W,W+H) -> conv1_3,
    # trailing columns zero (output padding; stripped on the host).
    w_hw = jnp.zeros((W + H, hw_cols), f32)
    w_hw = w_hw.at[:W, :H * rank].set(w2f)
    w_hw = w_hw.at[W:, H * rank:(H + W) * rank].set(w3f)

    w1_block = (C, C * rank) if w1_resident else (cc, C * rank)
    w1_index = (lambda bi, ci: (0, 0)) if w1_resident else (lambda bi, ci: (ci, 0))

    # VMEM budget: all double-buffered pipeline tiles + scratch, with margin.
    vmem_bytes = (
        2 * tb * cc * HW * elt                        # v tile (double-buffered)
        + 2 * HW * (H + W + 1) * elt                  # selection matrix
        + 2 * w1_block[0] * w1_block[1] * 4           # channel weight
        + 2 * (W + H) * hw_cols * 4                   # fused height/width weight
        + 2 * tb * n_out_pad * 4                      # output tile
        + _round_up(tb, 8) * (_round_up(C * rank, 128) + _round_up(H, 128)
                              + _round_up(W, 128)) * 4  # scratch accumulators
    )
    vmem_limit = min(112 << 20,
                     max(32 << 20, int(vmem_bytes * 1.25) + (2 << 20)))

    out = pl.pallas_call(
        functools.partial(ntd_kernel, H, W, cc, w1_resident),
        out_shape=jax.ShapeDtypeStruct((B, 1, n_out_pad), f32),
        grid_spec=pltpu.PrefetchScalarGridSpec(
            num_scalar_prefetch=0,
            grid=(B // tb, n_c),                      # reduction (channel) axis last
            in_specs=[
                pl.BlockSpec((tb, cc, HW), lambda bi, ci: (bi, ci, 0)),
                pl.BlockSpec((HW, H + W + 1), lambda bi, ci: (0, 0)),
                pl.BlockSpec(w1_block, w1_index),
                pl.BlockSpec((W + H, hw_cols), lambda bi, ci: (0, 0)),
            ],
            out_specs=pl.BlockSpec((tb, 1, n_out_pad), lambda bi, ci: (bi, 0, 0)),
            scratch_shapes=[
                pltpu.VMEM((tb, C * rank), f32),      # channel-branch accumulator
                pltpu.VMEM((tb, W), f32),             # per-w pool sums (height br.)
                pltpu.VMEM((tb, H), f32),             # per-h pool sums (width br.)
            ],
        ),
        compiler_params=pltpu.CompilerParams(
            dimension_semantics=("parallel", "arbitrary"),   # batch across TCs
            vmem_limit_bytes=vmem_limit,
        ),
    )(v3, sel, w1f, w_hw)

    # Host glue: free reshapes/slices only (padding stripped here).
    out_flat = out.reshape(B, n_out_pad)
    c_out = out_flat[:, :C * rank].reshape(B, C, rank)
    h_out = out_flat[:, C * rank:(C + H) * rank].reshape(B, H, rank)
    w_out = out_flat[:, (C + H) * rank:(C + H + W) * rank].reshape(B, W, rank)
    return c_out, h_out, w_out


def _reference(v, w1, w2, w3):
    """Pure-JAX reference of the exact PyTorch semantics."""
    cp = v.mean(axis=(2, 3))
    hp = v.mean(axis=(1, 2))
    wp = v.mean(axis=(1, 3))
    ref_c = jax.nn.sigmoid(jnp.einsum("bk,rok->bor", cp, w1))
    ref_h = jax.nn.sigmoid(jnp.einsum("bk,rok->bor", hp, w2))
    ref_w = jax.nn.sigmoid(jnp.einsum("bk,rok->bor", wp, w3))
    return ref_c, ref_h, ref_w


def _run_and_check(B, C, H, W, rank, seed=0, **kw):
    key = jax.random.PRNGKey(seed)
    kv, k1, k2, k3 = jax.random.split(key, 4)
    v = jax.random.normal(kv, (B, C, H, W), dtype=jnp.float32)
    w1 = 0.1 * jax.random.normal(k1, (rank, C, C), dtype=jnp.float32)
    w2 = 0.1 * jax.random.normal(k2, (rank, H, H), dtype=jnp.float32)
    w3 = 0.1 * jax.random.normal(k3, (rank, W, W), dtype=jnp.float32)

    fwd = jax.jit(functools.partial(ntd_forward, rank=rank, **kw))
    c_out, h_out, w_out = jax.block_until_ready(fwd(v, w1, w2, w3))

    ref_c, ref_h, ref_w = _reference(v, w1, w2, w3)
    assert c_out.shape == (B, C, rank)
    assert h_out.shape == (B, H, rank)
    assert w_out.shape == (B, W, rank)
    assert jnp.allclose(c_out, ref_c, atol=2e-5), "channel branch mismatch"
    assert jnp.allclose(h_out, ref_h, atol=2e-5), "height branch mismatch"
    assert jnp.allclose(w_out, ref_w, atol=2e-5), "width branch mismatch"


if __name__ == "__main__":
    # Base config (auto tiles: tb=1, cc=C, single chunk).
    _run_and_check(B=2, C=8, H=16, W=16, rank=4, seed=0)
    # Chunked channel reduction with the resident-w1 + in-kernel pl.ds slice path.
    _run_and_check(B=2, C=16, H=16, W=16, rank=4, seed=1, c_chunk=8, w1_resident=True)
    # Batch-blocked grid (tb=2) with chunked reduction and streamed (chunked) w1.
    _run_and_check(B=4, C=16, H=16, W=16, rank=4, seed=2, tb=2, c_chunk=8,
                   w1_resident=False)
    print("KERNEL_OK")
</pallas_src>

<mosaic_0001>
module attributes {stable_mosaic.version = 11 : i64} {
  func.func @ntd_kernel(%arg0: i32, %arg1: i32, %arg2: memref<1x8x256xf32, #tpu.memory_space<vmem>>, %arg3: memref<256x33xf32, #tpu.memory_space<vmem>>, %arg4: memref<8x32xf32, #tpu.memory_space<vmem>>, %arg5: memref<32x224xf32, #tpu.memory_space<vmem>>, %arg6: memref<1x1x256xf32, #tpu.memory_space<vmem>>, %arg7: memref<1x32xf32, #tpu.memory_space<vmem>>, %arg8: memref<1x16xf32, #tpu.memory_space<vmem>>, %arg9: memref<1x16xf32, #tpu.memory_space<vmem>>) attributes {dimension_semantics = [#tpu.dimension_semantics<parallel>, #tpu.dimension_semantics<arbitrary>], iteration_bounds = array<i64: 2, 1>, scalar_prefetch = 0 : i64, scratch_operands = 3 : i64, tpu.core_type = #tpu.core_type<tc>, window_params = [{transform_indices = @transform_0, window_bounds = array<i64: 1, 8, 256>}, {pipeline_mode = #tpu.pipeline_mode<synchronous>, transform_indices = @transform_1, window_bounds = array<i64: 256, 33>}, {transform_indices = @transform_2, window_bounds = array<i64: 8, 32>}, {pipeline_mode = #tpu.pipeline_mode<synchronous>, transform_indices = @transform_3, window_bounds = array<i64: 32, 224>}, {transform_indices = @transform_4, window_bounds = array<i64: 1, 1, 256>}]} {
    %c0_i32 = arith.constant 0 : i32
    %0 = arith.cmpi eq, %arg1, %c0_i32 : i32
    %1 = arith.extui %0 : i1 to i32
    %c0_i32_0 = arith.constant 0 : i32
    %2 = arith.cmpi ne, %1, %c0_i32_0 : i32
    scf.if %2 {
      %cst_24 = arith.constant 0.000000e+00 : f32
      %28 = vector.broadcast %cst_24 : f32 to vector<1x32xf32>
      %c0_25 = arith.constant 0 : index
      %c0_26 = arith.constant 0 : index
      %29 = vector.load %arg7[%c0_25, %c0_26] : memref<1x32xf32, #tpu.memory_space<vmem>>, vector<1x32xf32>
      tpu.vector_store %arg7[%c0_25, %c0_26], %28 {strides = array<i32>} : memref<1x32xf32, #tpu.memory_space<vmem>>, vector<1x32xf32>,
      %cst_27 = arith.constant 0.000000e+00 : f32
      %30 = vector.broadcast %cst_27 : f32 to vector<1x16xf32>
      %c0_28 = arith.constant 0 : index
      %c0_29 = arith.constant 0 : index
      %31 = vector.load %arg8[%c0_28, %c0_29] : memref<1x16xf32, #tpu.memory_space<vmem>>, vector<1x16xf32>
      tpu.vector_store %arg8[%c0_28, %c0_29], %30 {strides = array<i32>} : memref<1x16xf32, #tpu.memory_space<vmem>>, vector<1x16xf32>,
      %cst_30 = arith.constant 0.000000e+00 : f32
      %32 = vector.broadcast %cst_30 : f32 to vector<1x16xf32>
      %c0_31 = arith.constant 0 : index
      %c0_32 = arith.constant 0 : index
      %33 = vector.load %arg9[%c0_31, %c0_32] : memref<1x16xf32, #tpu.memory_space<vmem>>, vector<1x16xf32>
      tpu.vector_store %arg9[%c0_31, %c0_32], %32 {strides = array<i32>} : memref<1x16xf32, #tpu.memory_space<vmem>>, vector<1x16xf32>,
    } else {
    }
    %c0 = arith.constant 0 : index
    %c0_1 = arith.constant 0 : index
    %c0_2 = arith.constant 0 : index
    %3 = vector.load %arg2[%c0, %c0_1, %c0_2] : memref<1x8x256xf32, #tpu.memory_space<vmem>>, vector<1x8x256xf32>
    %4 = vector.shape_cast %3 : vector<1x8x256xf32> to vector<8x256xf32>
    %c0_3 = arith.constant 0 : index
    %c0_4 = arith.constant 0 : index
    %5 = vector.load %arg3[%c0_3, %c0_4] : memref<256x33xf32, #tpu.memory_space<vmem>>, vector<256x33xf32>
    %cst = arith.constant dense<0.000000e+00> : vector<8x33xf32>
    %6 = tpu.matmul %4, %5, %cst {dimension_numbers = #tpu.dot_dimension_numbers<[1], [0], [0], [1], [0, 0, 1, 1], [], []>} : vector<8x256xf32>, vector<256x33xf32>, vector<8x33xf32> -> vector<8x33xf32>
    %7 = vector.shape_cast %6 : vector<8x33xf32> to vector<1x8x33xf32>
    %c0_5 = arith.constant 0 : index
    %c0_6 = arith.constant 0 : index
    %8 = vector.load %arg4[%c0_5, %c0_6] : memref<8x32xf32, #tpu.memory_space<vmem>>, vector<8x32xf32>
    %9 = vector.extract_strided_slice %7 {offsets = [0, 0, 32], sizes = [1, 8, 1], strides = [1, 1, 1]} : vector<1x8x33xf32> to vector<1x8x1xf32>
    %10 = vector.shape_cast %9 : vector<1x8x1xf32> to vector<1x8xf32>
    %c0_7 = arith.constant 0 : index
    %c0_8 = arith.constant 0 : index
    %11 = vector.load %arg7[%c0_7, %c0_8] : memref<1x32xf32, #tpu.memory_space<vmem>>, vector<1x32xf32>
    %cst_9 = arith.constant dense<0.000000e+00> : vector<1x32xf32>
    %12 = tpu.matmul %10, %8, %cst_9 {dimension_numbers = #tpu.dot_dimension_numbers<[1], [0], [0], [1], [0, 0, 1, 1], [], []>} : vector<1x8xf32>, vector<8x32xf32>, vector<1x32xf32> -> vector<1x32xf32>
    %13 = arith.addf %11, %12 : vector<1x32xf32>
    %c0_10 = arith.constant 0 : index
    %c0_11 = arith.constant 0 : index
    %14 = vector.load %arg7[%c0_10, %c0_11] : memref<1x32xf32, #tpu.memory_space<vmem>>, vector<1x32xf32>
    tpu.vector_store %arg7[%c0_10, %c0_11], %13 {strides = array<i32>} : memref<1x32xf32, #tpu.memory_space<vmem>>, vector<1x32xf32>,
    %c0_12 = arith.constant 0 : index
    %c0_13 = arith.constant 0 : index
    %15 = vector.load %arg9[%c0_12, %c0_13] : memref<1x16xf32, #tpu.memory_space<vmem>>, vector<1x16xf32>
    %16 = vector.extract_strided_slice %7 {offsets = [0, 0, 0], sizes = [1, 8, 16], strides = [1, 1, 1]} : vector<1x8x33xf32> to vector<1x8x16xf32>
    %cst_14 = arith.constant dense<0.000000e+00> : vector<1x16xf32>
    %17 = vector.multi_reduction <add>, %16, %cst_14 [1] : vector<1x8x16xf32> to vector<1x16xf32>
    %18 = arith.addf %15, %17 : vector<1x16xf32>
    %c0_15 = arith.constant 0 : index
    %c0_16 = arith.constant 0 : index
    %19 = vector.load %arg9[%c0_15, %c0_16] : memref<1x16xf32, #tpu.memory_space<vmem>>, vector<1x16xf32>
    tpu.vector_store %arg9[%c0_15, %c0_16], %18 {strides = array<i32>} : memref<1x16xf32, #tpu.memory_space<vmem>>, vector<1x16xf32>,
    %c0_17 = arith.constant 0 : index
    %c0_18 = arith.constant 0 : index
    %20 = vector.load %arg8[%c0_17, %c0_18] : memref<1x16xf32, #tpu.memory_space<vmem>>, vector<1x16xf32>
    %21 = vector.extract_strided_slice %7 {offsets = [0, 0, 16], sizes = [1, 8, 16], strides = [1, 1, 1]} : vector<1x8x33xf32> to vector<1x8x16xf32>
    %cst_19 = arith.constant dense<0.000000e+00> : vector<1x16xf32>
    %22 = vector.multi_reduction <add>, %21, %cst_19 [1] : vector<1x8x16xf32> to vector<1x16xf32>
    %23 = arith.addf %20, %22 : vector<1x16xf32>
    %c0_20 = arith.constant 0 : index
    %c0_21 = arith.constant 0 : index
    %24 = vector.load %arg8[%c0_20, %c0_21] : memref<1x16xf32, #tpu.memory_space<vmem>>, vector<1x16xf32>
    tpu.vector_store %arg8[%c0_20, %c0_21], %23 {strides = array<i32>} : memref<1x16xf32, #tpu.memory_space<vmem>>, vector<1x16xf32>,
    %c0_i32_22 = arith.constant 0 : i32
    %25 = arith.cmpi eq, %arg1, %c0_i32_22 : i32
    %26 = arith.extui %25 : i1 to i32
    %c0_i32_23 = arith.constant 0 : i32
    %27 = arith.cmpi ne, %26, %c0_i32_23 : i32
    scf.if %27 {
      %c0_24 = arith.constant 0 : index
      %c0_25 = arith.constant 0 : index
      %28 = vector.load %arg8[%c0_24, %c0_25] : memref<1x16xf32, #tpu.memory_space<vmem>>, vector<1x16xf32>
      %c0_26 = arith.constant 0 : index
      %c0_27 = arith.constant 0 : index
      %29 = vector.load %arg9[%c0_26, %c0_27] : memref<1x16xf32, #tpu.memory_space<vmem>>, vector<1x16xf32>
      %30 = tpu.concatenate %28, %29 in 1 : vector<1x16xf32>, vector<1x16xf32> -> vector<1x32xf32>
      %c0_28 = arith.constant 0 : index
      %c0_29 = arith.constant 0 : index
      %31 = vector.load %arg5[%c0_28, %c0_29] : memref<32x224xf32, #tpu.memory_space<vmem>>, vector<32x224xf32>
      %cst_30 = arith.constant dense<0.000000e+00> : vector<1x224xf32>
      %32 = tpu.matmul %30, %31, %cst_30 {dimension_numbers = #tpu.dot_dimension_numbers<[1], [0], [0], [1], [0, 0, 1, 1], [], []>} : vector<1x32xf32>, vector<32x224xf32>, vector<1x224xf32> -> vector<1x224xf32>
      %c0_31 = arith.constant 0 : index
      %c0_32 = arith.constant 0 : index
      %33 = vector.load %arg7[%c0_31, %c0_32] : memref<1x32xf32, #tpu.memory_space<vmem>>, vector<1x32xf32>
      %34 = tpu.concatenate %33, %32 in 1 : vector<1x32xf32>, vector<1x224xf32> -> vector<1x256xf32>
      %35 = arith.negf %34 : vector<1x256xf32>
      %36 = math.exp %35 : vector<1x256xf32>
      %cst_33 = arith.constant 1.000000e+00 : f32
      %37 = vector.broadcast %cst_33 : f32 to vector<1x256xf32>
      %38 = arith.addf %37, %36 : vector<1x256xf32>
      %39 = arith.divf %37, %38 : vector<1x256xf32>
      %40 = vector.shape_cast %39 : vector<1x256xf32> to vector<1x1x256xf32>
      %c0_34 = arith.constant 0 : index
      %c0_35 = arith.constant 0 : index
      %c0_36 = arith.constant 0 : index
      %41 = vector.load %arg6[%c0_34, %c0_35, %c0_36] : memref<1x1x256xf32, #tpu.memory_space<vmem>>, vector<1x1x256xf32>
      tpu.vector_store %arg6[%c0_34, %c0_35, %c0_36], %40 {strides = array<i32>} : memref<1x1x256xf32, #tpu.memory_space<vmem>>, vector<1x1x256xf32>,
    } else {
    }
    return
  }
  func.func @transform_0(%arg0: i32, %arg1: i32) -> (i32, i32, i32) {
    %c0_i32 = arith.constant 0 : i32
    %c0_i32_0 = arith.constant 0 : i32
    return %arg0, %arg1, %c0_i32 : i32, i32, i32
  }
  func.func @transform_1(%arg0: i32, %arg1: i32) -> (i32, i32) {
    %c0_i32 = arith.constant 0 : i32
    %c0_i32_0 = arith.constant 0 : i32
    %c0_i32_1 = arith.constant 0 : i32
    return %c0_i32, %c0_i32_0 : i32, i32
  }
  func.func @transform_2(%arg0: i32, %arg1: i32) -> (i32, i32) {
    %c0_i32 = arith.constant 0 : i32
    %c0_i32_0 = arith.constant 0 : i32
    return %arg1, %c0_i32 : i32, i32
  }
  func.func @transform_3(%arg0: i32, %arg1: i32) -> (i32, i32) {
    %c0_i32 = arith.constant 0 : i32
    %c0_i32_0 = arith.constant 0 : i32
    %c0_i32_1 = arith.constant 0 : i32
    return %c0_i32, %c0_i32_0 : i32, i32
  }
  func.func @transform_4(%arg0: i32, %arg1: i32) -> (i32, i32, i32) {
    %c0_i32 = arith.constant 0 : i32
    %c0_i32_0 = arith.constant 0 : i32
    %c0_i32_1 = arith.constant 0 : i32
    return %arg0, %c0_i32, %c0_i32_0 : i32, i32, i32
  }
}

</mosaic_0001>

<bundles_post_ra>
// kernel: ntd_forward.1
= control target key start
LH: loop header
LB: loop body
LE: loop exit
PB: predicated region body
PF: predicated region fallthrough
CT: control target
= control target key end

     0   :  { %s905_s15 = smov 0   ;;  %s907_s16 = smov 0   ;;  %s1095_s0 = inlined_call_operand.vmem [shape: f32[2,8,256], index: 0, kind: input, shape index: {}]   ;;  %s1096_s1 = inlined_call_operand.vmem [shape: f32[256,33], index: 1, kind: input, shape index: {}]   ;;  %s1097_s2 = inlined_call_operand.vmem [shape: f32[8,32], index: 2, kind: input, shape index: {}]   ;;  %s1098_s3 = inlined_call_operand.vmem [shape: f32[32,224], index: 3, kind: input, shape index: {}]   ;;  %s1099_s4 = inlined_call_operand.vmem [shape: f32[2,1,256], index: 4, kind: output, shape index: {}]  }
   0x1   :  { %s909_s17 = smov 0  }
   0x2 LB: > { %s26_s18 = sadd.s32 1, %s867_s16  ;;  %p715_p0 = scmp.ge.s32.totalorder %s871_s17, 1  ;;  %s871_s17 = sphi %s909_s17, %s14_s17   ;;  %s867_s16 = sphi %s907_s16, %s1101_s16   ;;  %s863_s15 = sphi %s905_s15, %s1100_s15  }
   0x3   : > { %p28_p1 = scmp.ge.s32.totalorder %s26_s18, 2  ;;  %p189_p2 = scmp.lt.s32.totalorder %s871_s17, 3 }
   0x5   : > { %s1103_s18 = smov (%p28_p1, %s26_s18), 0  ;;  %p190_p3 = pnand %p715_p0, %p189_p2 }
   0x6   : > { %v266_v0 = vld [vmem:[%s1096_s1 + $0x80] sm:$0xff] (!%p190_p3)  ;;  %v267_v1 = vld [vmem:[%s1096_s1 + $0x88] sm:$0xff] (!%p190_p3)  ;;  %p222_p4 = scmp.lt.s32.totalorder (!%p190_p3), %s863_s15, 1  ;;  %v268_v5 = vld [vmem:[%s1096_s1 + $0x90] sm:$0xff] (!%p190_p3)  ;;  %vm245_vm0 = vcmask (!%p190_p3), 122880   ;;  %v873_v50 = vmov (!%p190_p3), 0.0   ;;  %v358_v52 = vlaneseq (!%p190_p3) }
   0x7   : > { %193 = sbr.rel (%p190_p3) target bundleno = 761 (0x2f9), region = 36  ;;  %v250_v2 = vld [vmem:[%s1096_s1] sm:$0xff] (!%p190_p3)  ;;  %v769_v3 = vpack.c.bf16 (!%p190_p3), %v267_v1, %v266_v0  ;;  %v251_v4 = vld [vmem:[%s1096_s1 + $0x8] sm:$0xff] (!%p190_p3)  ;;  %v269_v6 = vld [vmem:[%s1096_s1 + $0x98] sm:$0xff] (!%p190_p3)  ;;  %247 = vst.msk [vmem:[#allocation4] sm:$0x1] (!%p190_p3), %vm245_vm0, %v873_v50  ;;  %764 = vmatprep.subr.mxu1 (!%p190_p3), %v873_v50 }
   0x8   : > { %v771_v7 = vpack.c.bf16 (!%p190_p3), %v251_v4, %v250_v2  ;;  %v773_v8 = vpack.c.bf16 (!%p190_p3), %v269_v6, %v268_v5  ;;  %v252_v9 = vld [vmem:[%s1096_s1 + $0x10] sm:$0xff] (!%p190_p3)  ;;  %v253_v10 = vld [vmem:[%s1096_s1 + $0x18] sm:$0xff] (!%p190_p3)  ;;  %v270_v11 = vld [vmem:[%s1096_s1 + $0xa0] sm:$0xff] (!%p190_p3)  ;;  %246 = vst.msk [vmem:[#allocation3] sm:$0x1] (!%p190_p3), %vm245_vm0, %v873_v50  ;;  %v874_v51 = vmov (!%p190_p3), 32  }
   0x9   : > { %770 = vmatprep.subr.bf16.mxu0 (!%p190_p3), %v769_v3  ;;  %v271_v12 = vld [vmem:[%s1096_s1 + $0xa8] sm:$0xff] (!%p190_p3)  ;;  %v775_v13 = vpack.c.bf16 (!%p190_p3), %v253_v10, %v252_v9  ;;  %v254_v15 = vld [vmem:[%s1096_s1 + $0x20] sm:$0xff] (!%p190_p3)  ;;  %v272_v17 = vld [vmem:[%s1096_s1 + $0xb0] sm:$0xff] (!%p190_p3)  ;;  %840 = vset.pattern.permute.xlu0 (!%p190_p3), %v874_v51  ;;  %v361_v53 = vshrl.u32 (!%p190_p3), %v358_v52, 7  ;;  %v359_v54 = vand.u32 (!%p190_p3), 127, %v358_v52  ;;  %vm441_vm1 = vcmask (!%p190_p3), 130048  }
   0xa   : > { %772 = vmatpush3.bf16.msra.mxu0 (!%p190_p3), %v771_v7  ;;  %v777_v14 = vpack.c.bf16 (!%p190_p3), %v271_v12, %v270_v11  ;;  %v255_v16 = vld [vmem:[%s1096_s1 + $0x28] sm:$0xff] (!%p190_p3)  ;;  %v273_v18 = vld [vmem:[%s1096_s1 + $0xb8] sm:$0xff] (!%p190_p3)  ;;  %v256_v21 = vld [vmem:[%s1096_s1 + $0x30] sm:$0xff] (!%p190_p3)  ;;  %vm453_vm2 = vcmask (!%p190_p3), 261248   ;;  %v875_v0 = vmov (!%p190_p3), 1966171168  }
   0xb   : > { %774 = vmatprep.subr.bf16.mxu0 (!%p190_p3), %v773_v8  ;;  %v779_v19 = vpack.c.bf16 (!%p190_p3), %v255_v16, %v254_v15  ;;  %v781_v20 = vpack.c.bf16 (!%p190_p3), %v273_v18, %v272_v17  ;;  %v257_v22 = vld [vmem:[%s1096_s1 + $0x38] sm:$0xff] (!%p190_p3)  ;;  %v274_v23 = vld [vmem:[%s1096_s1 + $0xc0] sm:$0xff] (!%p190_p3)  ;;  %v275_v24 = vld [vmem:[%s1096_s1 + $0xc8] sm:$0xff] (!%p190_p3)  ;;  %v362_v55 = vsub.s32 (!%p190_p3), %v359_v54, %v361_v53  ;;  %v463_v1 = vunpack.c.l.s4 (!%p190_p3), %v875_v0  ;;  %s877_s27 = smov (!%p190_p3), 112   ;;  %s878_s29 = smov (!%p190_p3), 16  }
   0xc   : > { %v783_v26 = vpack.c.bf16 (!%p190_p3), %v257_v22, %v256_v21  ;;  %v785_v27 = vpack.c.bf16 (!%p190_p3), %v275_v24, %v274_v23  ;;  %v258_v28 = vld [vmem:[%s1096_s1 + $0x40] sm:$0xff] (!%p190_p3)  ;;  %v259_v29 = vld [vmem:[%s1096_s1 + $0x48] sm:$0xff] (!%p190_p3)  ;;  %v276_v30 = vld [vmem:[%s1096_s1 + $0xd0] sm:$0xff] (!%p190_p3)  ;;  %vm876_vm3 = vmmov (!%p190_p3), 0   ;;  %vm243_vm4 = vcmask (!%p190_p3), 253952   ;;  %s879_s20 = smov (!%p190_p3), 32  }
   0xd   : > { %v277_v31 = vld [vmem:[%s1096_s1 + $0xd8] sm:$0xff] (!%p190_p3)  ;;  %v787_v32 = vpack.c.bf16 (!%p190_p3), %v259_v29, %v258_v28  ;;  %v260_v34 = vld [vmem:[%s1096_s1 + $0x50] sm:$0xff] (!%p190_p3)  ;;  %v278_v36 = vld [vmem:[%s1096_s1 + $0xe0] sm:$0xff] (!%p190_p3)  ;;  %766 = vmatprep.mubr.msk.f32.mxu1 (!%p190_p3), %vm876_vm3, %v873_v50  ;;  %v464_v8 = vunpack.c.0.s8 (!%p190_p3), %v463_v1  ;;  %244 = vst.msk [vmem:[#allocation2] sm:$0x1] (!%p190_p3), %vm243_vm4, %v873_v50  ;;  %vm364_vm5 = vcmask (!%p190_p3), 64512  }
   0xe   : > { %s1105_s15 = smov (!%p222_p4, %s863_s15), 1  ;;  %776 = vmatpush3.bf16.msra.mxu0 %v775_v13  ;;  %v789_v33 = vpack.c.bf16 %v277_v31, %v276_v30  ;;  %v261_v35 = vld [vmem:[%s1096_s1 + $0x58] sm:$0xff]  ;;  %v279_v37 = vld [vmem:[%s1096_s1 + $0xe8] sm:$0xff]  ;;  %v262_v40 = vld [vmem:[%s1096_s1 + $0x60] sm:$0xff]  ;;  %vm503_vm6 = vcmask 261120   ;;  %vm621_vm7 = vcmp.lt.s32.totalorder %v358_v52, 256 }
   0xf   : > { %s726_s13 = sshll.u32 %s1105_s15, 4  ;;  %778 = vmatprep.subr.bf16.mxu0 %v777_v14  ;;  %v791_v38 = vpack.c.bf16 %v261_v35, %v260_v34  ;;  %v793_v39 = vpack.c.bf16 %v279_v37, %v278_v36  ;;  %v263_v41 = vld [vmem:[%s1096_s1 + $0x68] sm:$0xff]  ;;  %v280_v42 = vld [vmem:[%s1096_s1 + $0xf0] sm:$0xff]  ;;  %v281_v43 = vld [vmem:[%s1096_s1 + $0xf8] sm:$0xff]  ;;  %v1047_v14 = vsub.s32 %v464_v8, %v361_v53  ;;  %s718_s21 = sshll.u32 %s1105_s15, 1 }
  0x10   : > { %s971_s28 = scalar_lea.vmem %s1095_s0, %s726_s13  ;;  %v795_v44 = vpack.c.bf16 %v263_v41, %v262_v40  ;;  %v797_v45 = vpack.c.bf16 %v281_v43, %v280_v42  ;;  %v264_v46 = vld [vmem:[%s1096_s1 + $0x70] sm:$0xff]  ;;  %v265_v47 = vld [vmem:[%s1096_s1 + $0x78] sm:$0xff]  ;;  %v352_v61 = vld [vmem:[%s1097_s2] sm:$0xff]  ;;  %s238_s23 = scalar_lea.vmem %s1099_s4, %s718_s21 }
  0x11   : > { %v249_v25 = vld [vmem:[%s971_s28 + $0x8] sm:$0xff]  ;;  %v799_v48 = vpack.c.bf16 %v265_v47, %v264_v46  ;;  %v248_v49 = vld [vmem:[%s971_s28] sm:$0xff]  ;;  %765 = vmatpush3.msra.mxu1 %v352_v61  ;;  %v498_v5 = vld [vmem:[%s1098_s3 + $0x18] sm:$0xff] }
  0x12   : > { %346 = vmatprep.mubr.f32.mxu0 %v249_v25  ;;  %780 = vmatpush3.bf16.msra.mxu0 %v779_v19  ;;  %v496_v4 = vld [vmem:[%s1098_s3 + $0x8] sm:$0xff]  ;;  %v440_v15 = vld [vmem:[#allocation4] sm:$0x1]  ;;  %v497_v23 = vld [vmem:[%s1098_s3 + $0x10] sm:$0xff] }
  0x13   : > { %782 = vmatprep.subr.bf16.mxu0 %v781_v20  ;;  %v801_v9 = vpack.c.bf16 %v498_v5, %v496_v4  ;;  %v495_v22 = vld [vmem:[%s1098_s3] sm:$0xff]  ;;  %v500_v24 = vld [vmem:[%s1098_s3 + $0x28] sm:$0xff]  ;;  %v502_v25 = vld [vmem:[%s1098_s3 + $0x38] sm:$0xff] }
  0x14   : > { %v805_v29 = vpack.c.bf16 %v502_v25, %v500_v24  ;;  %v499_v30 = vld [vmem:[%s1098_s3 + $0x20] sm:$0xff]  ;;  %v501_v31 = vld [vmem:[%s1098_s3 + $0x30] sm:$0xff] }
  0x15   : > { %802 = vmatprep.subr.bf16.mxu1 %v801_v9  ;;  %v807_v34 = vpack.c.bf16 %v501_v31, %v499_v30 }
  0x16   : > { %784 = vmatpush3.bf16.msra.mxu0 %v783_v26 }
  0x17   : > { %786 = vmatprep.subr.bf16.mxu0 %v785_v27  ;;  %v803_v27 = vpack.c.bf16 %v497_v23, %v495_v22 }
  0x1a   : > { %788 = vmatpush3.bf16.msra.mxu0 %v787_v32  ;;  %v452_v32 = vld [vmem:[#allocation3] sm:$0x1] }
  0x1b   : > { %790 = vmatprep.subr.bf16.mxu0 %v789_v33 }
  0x1e   : > { %792 = vmatpush3.bf16.msra.mxu0 %v791_v38 }
  0x1f   : > { %794 = vmatprep.subr.bf16.mxu0 %v793_v39  ;;  %v353_v39 = vld [vmem:[#allocation2] sm:$0x1] }
  0x22   : > { %796 = vmatpush3.bf16.msra.mxu0 %v795_v44 }
  0x23   : > { %798 = vmatprep.subr.bf16.mxu0 %v797_v45 }
  0x26   : > { %800 = vmatpush3.bf16.msra.mxu0 %v799_v48 }
  0x29   : > { %347 = vmatmul.mubr.f32.vlgmr.msra.gmra.mrb[0].mxu0 %v248_v49 }
  0xfc   : > { %v759_v56 = vpop.f32.mrb[0].mxu0 }
  0xfd   : > { %v760_v57 = vpop.f32.mrb[1].mxu0 }
  0xfe   : > { %v761_v58 = vadd.f32 %v760_v57, %v759_v56 }
 0x100   : > { %v442_v59 = vsel %vm441_vm1, %v761_v58, 0.0  ;;  %v454_v60 = vsel %vm453_vm2, %v761_v58, 0.0  ;;  %356 = vperm.xlu0 %840, %v761_v58  }
 0x101   : > { %v443_v62 = vrot.slane %v442_v59, 4  ;;  %v455_v63 = vrot.slane %v454_v60, 4 }
 0x103   : > { %v444_v2 = vadd.f32 %v443_v62, %v442_v59  ;;  %v456_v3 = vadd.f32 %v455_v63, %v454_v60 }
 0x105   : > { %v445_v6 = vrot.slane %v444_v2, 2  ;;  %v457_v7 = vrot.slane %v456_v3, 2 }
 0x107   : > { %v446_v10 = vadd.f32 %v445_v6, %v444_v2  ;;  %v458_v11 = vadd.f32 %v457_v7, %v456_v3 }
 0x109   : > { %v447_v12 = vrot.slane %v446_v10, 1  ;;  %v459_v13 = vrot.slane %v458_v11, 1 }
 0x10b   : > { %v448_v16 = vadd.f32 %v447_v12, %v446_v10  ;;  %v460_v17 = vadd.f32 %v459_v13, %v458_v11 }
 0x10d   : > { %v449_v18 = vadd.f32 %v448_v16, %v440_v15  ;;  %v468_v19 = vrot.slane %v460_v17, %v1047_v14 }
 0x10f   : > { %451 = vst.msk [vmem:[#allocation4] sm:$0x1] %vm245_vm0, %v449_v18  ;;  %v475_v20 = vrot.slane %v468_v19, %v1047_v14 }
 0x111   : > { %476 = vrot.lane.b32.xlu0 %v475_v20, %s877_s27 }
 0x116   : > { %v720_v21 = vld [vmem:[#allocation4] ss:$0 sm:$0xff] }
 0x117   : > { %491 = vrot.lane.b32.xlu1 %v720_v21, %s878_s29 }
 0x17f   : > { %v357_v26 = vpop.permute.xlu0 %356 }
 0x180   : > { %v363_v28 = vrot.slane %v357_v26, %v362_v55 }
 0x182   : > { %767 = vmatmul.mubr.msk.f32.vlgmr.msra.gmra.mrb[0].mxu1 %vm364_vm5, %v363_v28 }
 0x183   : > { %v477_v33 = vpop.permute.xlu0 %476  ;;  %804 = vmatpush1.bf16.msra.mxu1 %v803_v27  ;;  %571 = vmatprep.mubr.f32.mxu1 %v873_v50 }
 0x184   : > { %v479_v35 = vadd.f32 %v477_v33, %v452_v32  ;;  %806 = vmatprep.subr.bf16.mxu1 %v805_v29 }
 0x186   : > { %480 = vst.msk [vmem:[#allocation3] sm:$0x1] %vm245_vm0, %v479_v35 }
 0x187   : > { %808 = vmatpush1.bf16.msra.mxu1 %v807_v34 }
 0x189   : > { %v492_v37 = vpop.permute.xlu1 %491 }
 0x18d   : > { %v484_v36 = vld [vmem:[#allocation3] sm:$0x1] }
 0x18e   : > { %v494_v38 = vsel %vm441_vm1, %v484_v36, %v492_v37 }
 0x18f   : > { %721 = vmatmul.mubr.msk.f32.vlgmr.msra.gmra.mrb[2].mxu1 %vm503_vm6, %v494_v38 }
 0x255   : > { %v433_v40 = vpop.f32.mrb[0].mxu1 }
 0x256   : > { %v437_v41 = vadd.f32 %v433_v40, %v353_v39  ;;  %v768_v42 = vpop.f32.mrb[1].mxu1 }
 0x258   : > { %439 = vst.msk [vmem:[#allocation2] sm:$0x1] %vm243_vm4, %v437_v41 }
 0x25f   : > { %v578_v45 = vld [vmem:[#allocation2] sm:$0x1] }
 0x262   : > { %v573_v43 = vpop.f32.mrb[2].mxu1 }
 0x263   : > { %581 = vrot.lane.b32.xlu1 %v573_v43, %s879_s20  ;;  %v575_v44 = vpop.f32.mrb[3].mxu1 }
 0x264   : > { %583 = vrot.lane.b32.xlu0 %v575_v44, %s879_s20 }
 0x2d5   : > { %v582_v46 = vpop.permute.xlu1 %581 }
 0x2d6   : > { %v588_v47 = vsel %vm503_vm6, %v578_v45, %v582_v46  ;;  %v584_v48 = vpop.permute.xlu0 %583 }
 0x2d7   : > { %v722_v49 = vmul.f32 -1.442695, %v588_v47  ;;  %v585_v50 = vsel %vm503_vm6, %v582_v46, %v584_v48 }
 0x2d8   : > { %v723_v51 = vmul.f32 -1.442695, %v585_v50 }
 0x2d9   : > { %841 = vpow2.f32 %v722_v49 }
 0x2da   : > { %843 = vpow2.f32 %v723_v51 }
 0x2e3   : > { %v842_v53 = vpop.eup %841 }
 0x2e4   : > { %v844_v54 = vpop.eup %843  ;;  %v595_v55 = vadd.f32 1.0, %v842_v53 }
 0x2e5   : > { %v596_v56 = vadd.f32 1.0, %v844_v54 }
 0x2e6   : > { %845 = vrcp.f32 %v595_v55 }
 0x2e7   : > { %847 = vrcp.f32 %v596_v56 }
 0x2f0   : > { %v846_v57 = vpop.eup %845 }
 0x2f1   : > { %v848_v58 = vpop.eup %847 }
 0x2f2   : > { %v603_v59 = vcombine.low %v846_v57, %v848_v58 }
 0x2f4   : > { %v610_v60 = vrot.slane %v603_v59, %v1047_v14 }
 0x2f6   : > { %v617_v61 = vrot.slane %v610_v60, %v1047_v14 }
 0x2f8   : > { %623 = vst.msk [vmem:[%s238_s23] sm:$0x3] %vm621_vm7, %v617_v61 }
 0x2f9 PF: > { %s14_s17 = sadd.s32 1, %s871_s17   ;;  %s1100_s15 = smov %s867_s16 }
 0x2fa   : > { %p11_p5 = scmp.ge.s32.totalorder %s14_s17, 4   ;;  %s1101_s16 = smov %s1103_s18 }
 0x2fc   :  { %13 = sbr.rel (!%p11_p5) target bundleno = 2 (0x2), region = 77 }

</bundles_post_ra>
